<compile_context>
chip_gen: v7x
topology: tpu7x:2x2x1
jax: 0.10.0
libtpu: 0.0.40
codegen_flags: <defaults>
</compile_context>

<pallas_src>
import jax
import jax.numpy as jnp
from jax.experimental import pallas as pl
from jax.experimental.pallas import tpu as pltpu


def _rnn_readout_kernel(x_ref, w_rnn_ref, w_out_ref, out_ref, hn_ref):
    """Fused RNN(tanh) + readout Linear for one batch tile.

    x_ref     : (Bb, T, I)    batch-first input tile
    w_rnn_ref : (I+H+1, H)    [W_ih^T ; W_hh^T ; (b_ih+b_hh)]
    w_out_ref : (H+1, O)      [W_out^T ; b_out]
    out_ref   : (Bb, T, O)    readout output (native batch-first order)
    hn_ref    : (1, Bb, H)    final hidden state (num_layers = 1)
    """
    Bb, T, I = x_ref.shape
    H = hn_ref.shape[-1]
    O = out_ref.shape[-1]
    f32 = jnp.float32
    hi = jax.lax.Precision.HIGHEST

    # Packed parameters (static ref slices, all sublane-aligned).
    wih = w_rnn_ref[:I, :]                   # (I, H)  = W_ih^T
    whh = w_rnn_ref[I:I + H, :]              # (H, H)  = W_hh^T
    b_rnn = w_rnn_ref[I + H:I + H + 1, :]    # (1, H)  = b_ih + b_hh
    wout = w_out_ref[:H, :]                  # (H, O)  = W_out^T
    bout = w_out_ref[H:H + 1, :]             # (1, O)  = b_out

    # --- Prologue: hoisted input projection (+ fused bias), one MXU matmul,
    #     result kept entirely in vregs (T == 8 keeps reshapes tile-aligned).
    x2 = x_ref[...].reshape(Bb * T, I)
    proj = (jnp.dot(x2, wih, precision=hi, preferred_element_type=f32)
            + b_rnn).reshape(Bb, T, H)       # (Bb, T, H), vreg-resident

    # --- Serial recurrence: fully unrolled, hidden state stays in registers.
    #     Critical path per step = matmul(h, W_hh) -> add -> tanh; the proj
    #     slices are independent of h so they schedule off the chain.
    # TODO(synk): weight-stationary W_hh via explicit MXU push/acc/pop.
    h = jnp.zeros((Bb, H), f32)
    hs = []
    for t in range(T):
        h = jnp.tanh(proj[:, t, :]
                     + jnp.dot(h, whh, precision=hi,
                               preferred_element_type=f32))
        hs.append(h)

    # Final hidden state, written exactly once, already (1, Bb, H).
    hn_ref[...] = h[None, :, :]

    # --- Epilogue: assemble the trajectory in vregs with concat-free masked
    #     selects (cheap VPU ops, off the critical path), then ONE readout
    #     matmul and ONE dense store of the whole output block.
    t_idx = jax.lax.broadcasted_iota(jnp.int32, (Bb, T, H), 1)
    hidden = jnp.zeros((Bb, T, H), f32)
    for t, h_t in enumerate(hs):
        hidden = jnp.where(t_idx == t, h_t[:, None, :], hidden)
    out = (jnp.dot(hidden.reshape(Bb * T, H), wout, precision=hi,
                   preferred_element_type=f32) + bout)
    out_ref[...] = out.reshape(Bb, T, O)


def readout_model_forward(x, params):
    """x: (B, T, I) batch-first.  Returns (output (B, T, O), hn (1, B, H))."""
    B, T, I = x.shape
    H = params["w_hh"].shape[0]
    O = params["w_out"].shape[0]

    # Pack parameters into two slabs (in real use, pack once outside hot path).
    w_rnn = jnp.concatenate(
        [params["w_ih"].T, params["w_hh"].T,
         (params["b_ih"] + params["b_hh"]).reshape(1, H)], axis=0)      # (I+H+1, H)
    w_out = jnp.concatenate(
        [params["w_out"].T, params["b_out"].reshape(1, O)], axis=0)     # (H+1, O)

    # Batch-tile grid: a single step at B=2; for large B this shards sequences
    # across 'parallel' grid steps (uses both v7x TensorCores), amortizing the
    # fixed pallas_call overhead across many independent sequences.
    block_b = B if B <= 128 else 128
    assert B % block_b == 0, "batch must be divisible by the batch tile"
    grid = (B // block_b,)

    out, hn = pl.pallas_call(
        _rnn_readout_kernel,
        out_shape=(
            jax.ShapeDtypeStruct((B, T, O), jnp.float32),
            jax.ShapeDtypeStruct((1, B, H), jnp.float32),
        ),
        grid=grid,
        in_specs=[
            pl.BlockSpec((block_b, T, I), lambda i: (i, 0, 0)),
            pl.BlockSpec((I + H + 1, H), lambda i: (0, 0)),
            pl.BlockSpec((H + 1, O), lambda i: (0, 0)),
        ],
        out_specs=(
            pl.BlockSpec((block_b, T, O), lambda i: (i, 0, 0)),
            pl.BlockSpec((1, block_b, H), lambda i: (0, i, 0)),
        ),
        compiler_params=pltpu.CompilerParams(
            dimension_semantics=("parallel",)),
    )(x, w_rnn, w_out)

    return out, hn


def _reference_forward(x, params):
    """Pure-JAX reference matching nn.RNN(tanh, num_layers=1, batch_first)."""
    hi = jax.lax.Precision.HIGHEST
    wih, whh = params["w_ih"], params["w_hh"]
    b = params["b_ih"] + params["b_hh"]
    wout, bout = params["w_out"], params["b_out"]
    B, T, _ = x.shape
    H = wih.shape[0]

    def step(h, x_t):
        h_new = jnp.tanh(jnp.dot(x_t, wih.T, precision=hi)
                         + jnp.dot(h, whh.T, precision=hi) + b)
        return h_new, h_new

    h0 = jnp.zeros((B, H), jnp.float32)
    hn, hiddens = jax.lax.scan(step, h0, jnp.transpose(x, (1, 0, 2)))
    hiddens = jnp.transpose(hiddens, (1, 0, 2))
    output = jnp.dot(hiddens, wout.T, precision=hi) + bout
    return output, hn[None]


if __name__ == "__main__":
    # model_dict: input_size=16, hidden_size=32, output_size=8, num_layers=1,
    #             architecture='TANH', gradient_clipping=None
    B, T, I, H, O = 2, 8, 16, 32, 8

    key = jax.random.PRNGKey(0)
    ks = jax.random.split(key, 7)
    scale = 1.0 / jnp.sqrt(H)
    params = {
        "w_ih": jax.random.uniform(ks[0], (H, I), jnp.float32, -scale, scale),
        "w_hh": jax.random.uniform(ks[1], (H, H), jnp.float32, -scale, scale),
        "b_ih": jax.random.uniform(ks[2], (H,), jnp.float32, -scale, scale),
        "b_hh": jax.random.uniform(ks[3], (H,), jnp.float32, -scale, scale),
        "w_out": jax.random.uniform(ks[4], (O, H), jnp.float32, -scale, scale),
        "b_out": jax.random.uniform(ks[5], (O,), jnp.float32, -scale, scale),
    }
    x = jax.random.normal(ks[6], (B, T, I), jnp.float32)

    fwd = jax.jit(readout_model_forward)
    output, hn = fwd(x, params)
    jax.block_until_ready((output, hn))

    ref_out, ref_hn = _reference_forward(x, params)
    assert output.shape == (B, T, O) and hn.shape == (1, B, H)
    assert jnp.allclose(output, ref_out, atol=1e-5, rtol=1e-5), (
        float(jnp.max(jnp.abs(output - ref_out))))
    assert jnp.allclose(hn, ref_hn, atol=1e-5, rtol=1e-5), (
        float(jnp.max(jnp.abs(hn - ref_hn))))

    print("KERNEL_OK")
</pallas_src>

<mosaic_0001>
module attributes {stable_mosaic.version = 11 : i64} {
  func.func @_rnn_readout_kernel(%arg0: i32, %arg1: memref<2x8x16xf32, #tpu.memory_space<vmem>>, %arg2: memref<49x32xf32, #tpu.memory_space<vmem>>, %arg3: memref<33x8xf32, #tpu.memory_space<vmem>>, %arg4: memref<2x8x8xf32, #tpu.memory_space<vmem>>, %arg5: memref<1x2x32xf32, #tpu.memory_space<vmem>>) attributes {dimension_semantics = [#tpu.dimension_semantics<parallel>], iteration_bounds = array<i64: 1>, scalar_prefetch = 0 : i64, scratch_operands = 0 : i64, tpu.core_type = #tpu.core_type<tc>, window_params = [{transform_indices = @transform_0, window_bounds = array<i64: 2, 8, 16>}, {pipeline_mode = #tpu.pipeline_mode<synchronous>, transform_indices = @transform_1, window_bounds = array<i64: 49, 32>}, {pipeline_mode = #tpu.pipeline_mode<synchronous>, transform_indices = @transform_2, window_bounds = array<i64: 33, 8>}, {transform_indices = @transform_3, window_bounds = array<i64: 2, 8, 8>}, {transform_indices = @transform_4, window_bounds = array<i64: 1, 2, 32>}]} {
    %c0 = arith.constant 0 : index
    %c0_0 = arith.constant 0 : index
    %0 = vector.load %arg2[%c0, %c0_0] : memref<49x32xf32, #tpu.memory_space<vmem>>, vector<16x32xf32>
    %c16 = arith.constant 16 : index
    %c0_1 = arith.constant 0 : index
    %1 = vector.load %arg2[%c16, %c0_1] : memref<49x32xf32, #tpu.memory_space<vmem>>, vector<32x32xf32>
    %c48 = arith.constant 48 : index
    %c0_2 = arith.constant 0 : index
    %2 = vector.load %arg2[%c48, %c0_2] : memref<49x32xf32, #tpu.memory_space<vmem>>, vector<1x32xf32>
    %c0_3 = arith.constant 0 : index
    %c0_4 = arith.constant 0 : index
    %3 = vector.load %arg3[%c0_3, %c0_4] : memref<33x8xf32, #tpu.memory_space<vmem>>, vector<32x8xf32>
    %c32 = arith.constant 32 : index
    %c0_5 = arith.constant 0 : index
    %4 = vector.load %arg3[%c32, %c0_5] : memref<33x8xf32, #tpu.memory_space<vmem>>, vector<1x8xf32>
    %c0_6 = arith.constant 0 : index
    %c0_7 = arith.constant 0 : index
    %c0_8 = arith.constant 0 : index
    %5 = vector.load %arg1[%c0_6, %c0_7, %c0_8] : memref<2x8x16xf32, #tpu.memory_space<vmem>>, vector<2x8x16xf32>
    %6 = vector.shape_cast %5 : vector<2x8x16xf32> to vector<16x16xf32>
    %cst = arith.constant dense<0.000000e+00> : vector<16x32xf32>
    %7 = tpu.matmul %6, %0, %cst {dimension_numbers = #tpu.dot_dimension_numbers<[1], [0], [0], [1], [0, 0, 1, 1], [], []>, precision = #tpu.contract_precision<fp32>} : vector<16x16xf32>, vector<16x32xf32>, vector<16x32xf32> -> vector<16x32xf32>
    %8 = vector.broadcast %2 : vector<1x32xf32> to vector<16x32xf32>
    %9 = arith.addf %7, %8 : vector<16x32xf32>
    %10 = vector.shape_cast %9 : vector<16x32xf32> to vector<2x8x32xf32>
    %cst_9 = arith.constant 0.000000e+00 : f32
    %11 = vector.broadcast %cst_9 : f32 to vector<2x32xf32>
    %12 = vector.extract_strided_slice %10 {offsets = [0, 0, 0], sizes = [2, 1, 32], strides = [1, 1, 1]} : vector<2x8x32xf32> to vector<2x1x32xf32>
    %13 = vector.shape_cast %12 : vector<2x1x32xf32> to vector<2x32xf32>
    %cst_10 = arith.constant dense<0.000000e+00> : vector<2x32xf32>
    %14 = tpu.matmul %11, %1, %cst_10 {dimension_numbers = #tpu.dot_dimension_numbers<[1], [0], [0], [1], [0, 0, 1, 1], [], []>, precision = #tpu.contract_precision<fp32>} : vector<2x32xf32>, vector<32x32xf32>, vector<2x32xf32> -> vector<2x32xf32>
    %15 = arith.addf %13, %14 : vector<2x32xf32>
    %16 = math.tanh %15 : vector<2x32xf32>
    %17 = vector.extract_strided_slice %10 {offsets = [0, 1, 0], sizes = [2, 1, 32], strides = [1, 1, 1]} : vector<2x8x32xf32> to vector<2x1x32xf32>
    %18 = vector.shape_cast %17 : vector<2x1x32xf32> to vector<2x32xf32>
    %cst_11 = arith.constant dense<0.000000e+00> : vector<2x32xf32>
    %19 = tpu.matmul %16, %1, %cst_11 {dimension_numbers = #tpu.dot_dimension_numbers<[1], [0], [0], [1], [0, 0, 1, 1], [], []>, precision = #tpu.contract_precision<fp32>} : vector<2x32xf32>, vector<32x32xf32>, vector<2x32xf32> -> vector<2x32xf32>
    %20 = arith.addf %18, %19 : vector<2x32xf32>
    %21 = math.tanh %20 : vector<2x32xf32>
    %22 = vector.extract_strided_slice %10 {offsets = [0, 2, 0], sizes = [2, 1, 32], strides = [1, 1, 1]} : vector<2x8x32xf32> to vector<2x1x32xf32>
    %23 = vector.shape_cast %22 : vector<2x1x32xf32> to vector<2x32xf32>
    %cst_12 = arith.constant dense<0.000000e+00> : vector<2x32xf32>
    %24 = tpu.matmul %21, %1, %cst_12 {dimension_numbers = #tpu.dot_dimension_numbers<[1], [0], [0], [1], [0, 0, 1, 1], [], []>, precision = #tpu.contract_precision<fp32>} : vector<2x32xf32>, vector<32x32xf32>, vector<2x32xf32> -> vector<2x32xf32>
    %25 = arith.addf %23, %24 : vector<2x32xf32>
    %26 = math.tanh %25 : vector<2x32xf32>
    %27 = vector.extract_strided_slice %10 {offsets = [0, 3, 0], sizes = [2, 1, 32], strides = [1, 1, 1]} : vector<2x8x32xf32> to vector<2x1x32xf32>
    %28 = vector.shape_cast %27 : vector<2x1x32xf32> to vector<2x32xf32>
    %cst_13 = arith.constant dense<0.000000e+00> : vector<2x32xf32>
    %29 = tpu.matmul %26, %1, %cst_13 {dimension_numbers = #tpu.dot_dimension_numbers<[1], [0], [0], [1], [0, 0, 1, 1], [], []>, precision = #tpu.contract_precision<fp32>} : vector<2x32xf32>, vector<32x32xf32>, vector<2x32xf32> -> vector<2x32xf32>
    %30 = arith.addf %28, %29 : vector<2x32xf32>
    %31 = math.tanh %30 : vector<2x32xf32>
    %32 = vector.extract_strided_slice %10 {offsets = [0, 4, 0], sizes = [2, 1, 32], strides = [1, 1, 1]} : vector<2x8x32xf32> to vector<2x1x32xf32>
    %33 = vector.shape_cast %32 : vector<2x1x32xf32> to vector<2x32xf32>
    %cst_14 = arith.constant dense<0.000000e+00> : vector<2x32xf32>
    %34 = tpu.matmul %31, %1, %cst_14 {dimension_numbers = #tpu.dot_dimension_numbers<[1], [0], [0], [1], [0, 0, 1, 1], [], []>, precision = #tpu.contract_precision<fp32>} : vector<2x32xf32>, vector<32x32xf32>, vector<2x32xf32> -> vector<2x32xf32>
    %35 = arith.addf %33, %34 : vector<2x32xf32>
    %36 = math.tanh %35 : vector<2x32xf32>
    %37 = vector.extract_strided_slice %10 {offsets = [0, 5, 0], sizes = [2, 1, 32], strides = [1, 1, 1]} : vector<2x8x32xf32> to vector<2x1x32xf32>
    %38 = vector.shape_cast %37 : vector<2x1x32xf32> to vector<2x32xf32>
    %cst_15 = arith.constant dense<0.000000e+00> : vector<2x32xf32>
    %39 = tpu.matmul %36, %1, %cst_15 {dimension_numbers = #tpu.dot_dimension_numbers<[1], [0], [0], [1], [0, 0, 1, 1], [], []>, precision = #tpu.contract_precision<fp32>} : vector<2x32xf32>, vector<32x32xf32>, vector<2x32xf32> -> vector<2x32xf32>
    %40 = arith.addf %38, %39 : vector<2x32xf32>
    %41 = math.tanh %40 : vector<2x32xf32>
    %42 = vector.extract_strided_slice %10 {offsets = [0, 6, 0], sizes = [2, 1, 32], strides = [1, 1, 1]} : vector<2x8x32xf32> to vector<2x1x32xf32>
    %43 = vector.shape_cast %42 : vector<2x1x32xf32> to vector<2x32xf32>
    %cst_16 = arith.constant dense<0.000000e+00> : vector<2x32xf32>
    %44 = tpu.matmul %41, %1, %cst_16 {dimension_numbers = #tpu.dot_dimension_numbers<[1], [0], [0], [1], [0, 0, 1, 1], [], []>, precision = #tpu.contract_precision<fp32>} : vector<2x32xf32>, vector<32x32xf32>, vector<2x32xf32> -> vector<2x32xf32>
    %45 = arith.addf %43, %44 : vector<2x32xf32>
    %46 = math.tanh %45 : vector<2x32xf32>
    %47 = vector.extract_strided_slice %10 {offsets = [0, 7, 0], sizes = [2, 1, 32], strides = [1, 1, 1]} : vector<2x8x32xf32> to vector<2x1x32xf32>
    %48 = vector.shape_cast %47 : vector<2x1x32xf32> to vector<2x32xf32>
    %cst_17 = arith.constant dense<0.000000e+00> : vector<2x32xf32>
    %49 = tpu.matmul %46, %1, %cst_17 {dimension_numbers = #tpu.dot_dimension_numbers<[1], [0], [0], [1], [0, 0, 1, 1], [], []>, precision = #tpu.contract_precision<fp32>} : vector<2x32xf32>, vector<32x32xf32>, vector<2x32xf32> -> vector<2x32xf32>
    %50 = arith.addf %48, %49 : vector<2x32xf32>
    %51 = math.tanh %50 : vector<2x32xf32>
    %52 = vector.shape_cast %51 : vector<2x32xf32> to vector<1x2x32xf32>
    %c0_18 = arith.constant 0 : index
    %c0_19 = arith.constant 0 : index
    %c0_20 = arith.constant 0 : index
    %53 = vector.load %arg5[%c0_18, %c0_19, %c0_20] : memref<1x2x32xf32, #tpu.memory_space<vmem>>, vector<1x2x32xf32>
    tpu.vector_store %arg5[%c0_18, %c0_19, %c0_20], %52 {strides = array<i32>} : memref<1x2x32xf32, #tpu.memory_space<vmem>>, vector<1x2x32xf32>,
    %54 = tpu.iota {dimensions = array<i32: 1>} : vector<2x8x32xi32>
    %cst_21 = arith.constant 0.000000e+00 : f32
    %55 = vector.broadcast %cst_21 : f32 to vector<2x8x32xf32>
    %c0_i32 = arith.constant 0 : i32
    %56 = vector.broadcast %c0_i32 : i32 to vector<2x8x32xi32>
    %57 = arith.cmpi eq, %54, %56 : vector<2x8x32xi32>
    %58 = vector.shape_cast %16 : vector<2x32xf32> to vector<2x1x32xf32>
    %59 = vector.shape_cast %58 : vector<2x1x32xf32> to vector<2x1x32xf32>
    %60 = vector.broadcast %59 : vector<2x1x32xf32> to vector<2x8x32xf32>
    %61 = arith.select %57, %60, %55 : vector<2x8x32xi1>, vector<2x8x32xf32>
    %c1_i32 = arith.constant 1 : i32
    %62 = vector.broadcast %c1_i32 : i32 to vector<2x8x32xi32>
    %63 = arith.cmpi eq, %54, %62 : vector<2x8x32xi32>
    %64 = vector.shape_cast %21 : vector<2x32xf32> to vector<2x1x32xf32>
    %65 = vector.shape_cast %64 : vector<2x1x32xf32> to vector<2x1x32xf32>
    %66 = vector.broadcast %65 : vector<2x1x32xf32> to vector<2x8x32xf32>
    %67 = arith.select %63, %66, %61 : vector<2x8x32xi1>, vector<2x8x32xf32>
    %c2_i32 = arith.constant 2 : i32
    %68 = vector.broadcast %c2_i32 : i32 to vector<2x8x32xi32>
    %69 = arith.cmpi eq, %54, %68 : vector<2x8x32xi32>
    %70 = vector.shape_cast %26 : vector<2x32xf32> to vector<2x1x32xf32>
    %71 = vector.shape_cast %70 : vector<2x1x32xf32> to vector<2x1x32xf32>
    %72 = vector.broadcast %71 : vector<2x1x32xf32> to vector<2x8x32xf32>
    %73 = arith.select %69, %72, %67 : vector<2x8x32xi1>, vector<2x8x32xf32>
    %c3_i32 = arith.constant 3 : i32
    %74 = vector.broadcast %c3_i32 : i32 to vector<2x8x32xi32>
    %75 = arith.cmpi eq, %54, %74 : vector<2x8x32xi32>
    %76 = vector.shape_cast %31 : vector<2x32xf32> to vector<2x1x32xf32>
    %77 = vector.shape_cast %76 : vector<2x1x32xf32> to vector<2x1x32xf32>
    %78 = vector.broadcast %77 : vector<2x1x32xf32> to vector<2x8x32xf32>
    %79 = arith.select %75, %78, %73 : vector<2x8x32xi1>, vector<2x8x32xf32>
    %c4_i32 = arith.constant 4 : i32
    %80 = vector.broadcast %c4_i32 : i32 to vector<2x8x32xi32>
    %81 = arith.cmpi eq, %54, %80 : vector<2x8x32xi32>
    %82 = vector.shape_cast %36 : vector<2x32xf32> to vector<2x1x32xf32>
    %83 = vector.shape_cast %82 : vector<2x1x32xf32> to vector<2x1x32xf32>
    %84 = vector.broadcast %83 : vector<2x1x32xf32> to vector<2x8x32xf32>
    %85 = arith.select %81, %84, %79 : vector<2x8x32xi1>, vector<2x8x32xf32>
    %c5_i32 = arith.constant 5 : i32
    %86 = vector.broadcast %c5_i32 : i32 to vector<2x8x32xi32>
    %87 = arith.cmpi eq, %54, %86 : vector<2x8x32xi32>
    %88 = vector.shape_cast %41 : vector<2x32xf32> to vector<2x1x32xf32>
    %89 = vector.shape_cast %88 : vector<2x1x32xf32> to vector<2x1x32xf32>
    %90 = vector.broadcast %89 : vector<2x1x32xf32> to vector<2x8x32xf32>
    %91 = arith.select %87, %90, %85 : vector<2x8x32xi1>, vector<2x8x32xf32>
    %c6_i32 = arith.constant 6 : i32
    %92 = vector.broadcast %c6_i32 : i32 to vector<2x8x32xi32>
    %93 = arith.cmpi eq, %54, %92 : vector<2x8x32xi32>
    %94 = vector.shape_cast %46 : vector<2x32xf32> to vector<2x1x32xf32>
    %95 = vector.shape_cast %94 : vector<2x1x32xf32> to vector<2x1x32xf32>
    %96 = vector.broadcast %95 : vector<2x1x32xf32> to vector<2x8x32xf32>
    %97 = arith.select %93, %96, %91 : vector<2x8x32xi1>, vector<2x8x32xf32>
    %c7_i32 = arith.constant 7 : i32
    %98 = vector.broadcast %c7_i32 : i32 to vector<2x8x32xi32>
    %99 = arith.cmpi eq, %54, %98 : vector<2x8x32xi32>
    %100 = vector.shape_cast %51 : vector<2x32xf32> to vector<2x1x32xf32>
    %101 = vector.shape_cast %100 : vector<2x1x32xf32> to vector<2x1x32xf32>
    %102 = vector.broadcast %101 : vector<2x1x32xf32> to vector<2x8x32xf32>
    %103 = arith.select %99, %102, %97 : vector<2x8x32xi1>, vector<2x8x32xf32>
    %104 = vector.shape_cast %103 : vector<2x8x32xf32> to vector<16x32xf32>
    %cst_22 = arith.constant dense<0.000000e+00> : vector<16x8xf32>
    %105 = tpu.matmul %104, %3, %cst_22 {dimension_numbers = #tpu.dot_dimension_numbers<[1], [0], [0], [1], [0, 0, 1, 1], [], []>, precision = #tpu.contract_precision<fp32>} : vector<16x32xf32>, vector<32x8xf32>, vector<16x8xf32> -> vector<16x8xf32>
    %106 = vector.broadcast %4 : vector<1x8xf32> to vector<16x8xf32>
    %107 = arith.addf %105, %106 : vector<16x8xf32>
    %108 = vector.shape_cast %107 : vector<16x8xf32> to vector<2x8x8xf32>
    %c0_23 = arith.constant 0 : index
    %c0_24 = arith.constant 0 : index
    %c0_25 = arith.constant 0 : index
    %109 = vector.load %arg4[%c0_23, %c0_24, %c0_25] : memref<2x8x8xf32, #tpu.memory_space<vmem>>, vector<2x8x8xf32>
    tpu.vector_store %arg4[%c0_23, %c0_24, %c0_25], %108 {strides = array<i32>} : memref<2x8x8xf32, #tpu.memory_space<vmem>>, vector<2x8x8xf32>,
    return
  }
  func.func @transform_0(%arg0: i32) -> (i32, i32, i32) {
    %c0_i32 = arith.constant 0 : i32
    %c0_i32_0 = arith.constant 0 : i32
    %c0_i32_1 = arith.constant 0 : i32
    return %arg0, %c0_i32, %c0_i32_0 : i32, i32, i32
  }
  func.func @transform_1(%arg0: i32) -> (i32, i32) {
    %c0_i32 = arith.constant 0 : i32
    %c0_i32_0 = arith.constant 0 : i32
    %c0_i32_1 = arith.constant 0 : i32
    return %c0_i32, %c0_i32_0 : i32, i32
  }
  func.func @transform_2(%arg0: i32) -> (i32, i32) {
    %c0_i32 = arith.constant 0 : i32
    %c0_i32_0 = arith.constant 0 : i32
    %c0_i32_1 = arith.constant 0 : i32
    return %c0_i32, %c0_i32_0 : i32, i32
  }
  func.func @transform_3(%arg0: i32) -> (i32, i32, i32) {
    %c0_i32 = arith.constant 0 : i32
    %c0_i32_0 = arith.constant 0 : i32
    %c0_i32_1 = arith.constant 0 : i32
    return %arg0, %c0_i32, %c0_i32_0 : i32, i32, i32
  }
  func.func @transform_4(%arg0: i32) -> (i32, i32, i32) {
    %c0_i32 = arith.constant 0 : i32
    %c0_i32_0 = arith.constant 0 : i32
    %c0_i32_1 = arith.constant 0 : i32
    return %c0_i32, %arg0, %c0_i32_0 : i32, i32, i32
  }
}

</mosaic_0001>

<bundles_post_ra>
// kernel: readout_model_forward.1
= control target key start
LH: loop header
LB: loop body
LE: loop exit
PB: predicated region body
PF: predicated region fallthrough
CT: control target
= control target key end

     0   :  { %10 = vsyncpa [#allocation3], 0  ;;  %vm36_vm0 = vcmask 130048   ;;  %v6705_v7 = vmov 0.0|0.0   ;;  %s7290_s0 = inlined_call_operand.vmem [shape: f32[2,8,16], index: 0, kind: input, shape index: {}]   ;;  %s7291_s1 = inlined_call_operand.vmem [shape: f32[49,32], index: 1, kind: input, shape index: {}]   ;;  %s7292_s2 = inlined_call_operand.vmem [shape: f32[33,8], index: 2, kind: input, shape index: {}]   ;;  %s7293_s3 = inlined_call_operand.hbm [shape: f32[2,8,8], index: 3, kind: output, shape index: {0}]   ;;  %s7294_s4 = inlined_call_operand.hbm [shape: f32[1,2,32], index: 4, kind: output, shape index: {1}]  }
   0x1   :  { %v18_v0 = vld [vmem:[%s7291_s1] sm:$0xff]  ;;  %v19_v1 = vld [vmem:[%s7291_s1 + $0x8] sm:$0xff]  ;;  %6185 = vmatprep.subr.bf16.mxu1 %v6705_v7  ;;  %v6753_v8 = vld [vmem:[%s7291_s1 + $0x10] sm:$0xff] }
   0x2   :  { %v30_v2 = vld [vmem:[%s7290_s0] sm:$0xff]  ;;  %v44_v3 = vand.u32 4294901760, %v18_v0  ;;  %v47_v4 = vand.u32 4294901760, %v19_v1  ;;  %v31_v5 = vld [vmem:[%s7290_s0 + $0x8] sm:$0xff]  ;;  %v6758_v9 = vld [vmem:[%s7291_s1 + $0x18] sm:$0xff]  ;;  %v550_v12 = vand.u32 4294901760, %v6753_v8 }
   0x3   :  { %v38_v6 = vsel %vm36_vm0, %v30_v2, 0  ;;  %v41_v10 = vsel %vm36_vm0, %v31_v5, 0  ;;  %v553_v13 = vand.u32 4294901760, %v6758_v9  ;;  %v6767_v14 = vld [vmem:[%s7291_s1 + $0x20] sm:$0xff]  ;;  %v6780_v19 = vld [vmem:[%s7291_s1 + $0x28] sm:$0xff] }
   0x4   :  { %v6760_v11 = vand.u32 4294901760, %v38_v6  ;;  %v6769_v15 = vpack.c.bf16 %v47_v4, %v44_v3  ;;  %v6771_v16 = vand.u32 4294901760, %v41_v10  ;;  %v6773_v17 = vsub.f32 %v18_v0, %v44_v3 }
   0x5   :  { %v6775_v18 = vsub.f32 %v19_v1, %v47_v4 }
   0x6   :  { %11 = vsyncpa [#allocation5], 0  ;;  %v6783_v20 = vsub.f32 %v38_v6, %v6760_v11  ;;  %v6788_v21 = vsub.f32 %v6753_v8, %v550_v12  ;;  %v6793_v22 = vsub.f32 %v6758_v9, %v553_v13  ;;  %6156 = vmatprep.subr.bf16.mxu0 %v6769_v15  ;;  %v6797_v23 = vsub.f32 %v41_v10, %v6771_v16  ;;  %v5217_v4 = vld [vmem:[%s7291_s1 + $0x30] ss:$0 sm:$0xff]  ;;  %s6708_s13 = smov [#allocation4]  }
   0x7   :  { %v133_v24 = vand.u32 4294901760, %v6773_v17  ;;  %v140_v25 = vand.u32 4294901760, %v6775_v18  ;;  %v556_v26 = vand.u32 4294901760, %v6767_v14  ;;  %6158 = vmatpush3.bf16.msra.mxu0 %v6769_v15  ;;  %v559_v30 = vand.u32 4294901760, %v6780_v19  ;;  %s5205_s14 = sshll.u32 %s6708_s13, 4  ;;  %s5206_s14 = int_to_ptr.vmem [resolvable:$true] %s5205_s14 }
   0x8   :  { %v112_v27 = vand.u32 4294901760, %v6783_v20  ;;  %v631_v28 = vand.u32 4294901760, %v6788_v21  ;;  %v638_v29 = vand.u32 4294901760, %v6793_v22  ;;  %v122_v31 = vand.u32 4294901760, %v6797_v23  ;;  %s6657_s15 = scalar_lea.vmem %s5206_s14, 32  ;;  %p6662_p1 = scmp.lt.s32.totalorder %s5206_s14, %s5206_s14 }
   0x9   :  { %v134_v32 = vsub.f32 %v6773_v17, %v133_v24  ;;  %v141_v33 = vsub.f32 %v6775_v18, %v140_v25  ;;  %v6813_v34 = vsub.f32 %v6767_v14, %v556_v26  ;;  %v651_v45 = vsub.f32 %v6780_v19, %v559_v30  ;;  %p6658_p0 = scmp.ne.s32.totalorder %s5206_s14, %s6657_s15  ;;  %p6663_p2 = scmp.lt.s32.totalorder %s6657_s15, %s6657_s15 }
   0xa   :  { %v113_v35 = vsub.f32 %v6783_v20, %v112_v27  ;;  %v632_v36 = vsub.f32 %v6788_v21, %v631_v28  ;;  %v639_v37 = vsub.f32 %v6793_v22, %v638_v29  ;;  %v123_v38 = vsub.f32 %v6797_v23, %v122_v31 }
   0xb   :  { %v135_v39 = vand.u32 4294901760, %v134_v32  ;;  %v142_v40 = vand.u32 4294901760, %v141_v33  ;;  %v645_v41 = vand.u32 4294901760, %v6813_v34  ;;  %v652_v50 = vand.u32 4294901760, %v651_v45  ;;  %p6664_p3 = por %p6663_p2, %p6662_p1 }
   0xc   :  { %v114_v42 = vand.u32 4294901760, %v113_v35  ;;  %v633_v43 = vand.u32 4294901760, %v632_v36  ;;  %v640_v44 = vand.u32 4294901760, %v639_v37  ;;  %v124_v46 = vand.u32 4294901760, %v123_v38 }
   0xd   :  { %v6159_v47 = vpack.c.bf16 %v142_v40, %v135_v39  ;;  %v646_v48 = vsub.f32 %v6813_v34, %v645_v41  ;;  %vm6706_vm1 = vmmov 0   ;;  %v6707_v51 = vmov 0.0   ;;  %p6665_p4 = pnand %p6664_p3, %p6658_p0 }
   0xe   :  { %5523 = vmatprep.mubr.f32.mxu0 %v114_v42  ;;  %v6828_v49 = vpack.c.bf16 %v640_v44, %v633_v43  ;;  %5580 = vmatprep.mubr.msk.f32.mxu1 %vm6706_vm1, %v6707_v51  ;;  %v6163_v52 = vpack.c.bf16 %v6775_v18, %v6773_v17  ;;  %v653_v54 = vsub.f32 %v651_v45, %v652_v50  ;;  %vm1045_vm2 = vcmask 1041409  }
   0xf   :  { %5524 = vmatmul.mubr.f32.vlgmr.msra.gmra.mrb[0].mxu0 %v124_v46  ;;  %6160 = vmatprep.subr.bf16.mxu0 %v6159_v47  ;;  %v647_v53 = vand.u32 4294901760, %v646_v48  ;;  %v6842_v57 = vpack.c.bf16 %v6793_v22, %v6788_v21  ;;  %v6851_v58 = vpack.c.bf16 %v651_v45, %v6813_v34  ;;  %v6171_v59 = vpack.c.bf16 %v140_v25, %v133_v24 }
  0x10   :  { %6187 = vmatpush3.bf16.msra.mxu1 %v6828_v49  ;;  %6162 = vmatpush3.bf16.msra.mxu0 %v6159_v47  ;;  %v654_v55 = vand.u32 4294901760, %v653_v54  ;;  %v6860_v60 = vpack.c.bf16 %v553_v13, %v550_v12  ;;  %v6869_v61 = vpack.c.bf16 %v559_v30, %v556_v26  ;;  %v6880_v62 = vpack.c.bf16 %v638_v29, %v631_v28 }
  0x11   :  { %6188 = vmatprep.subr.bf16.mxu1 %v6705_v7  ;;  %5530 = vmatprep.mubr.f32.mxu0 %v6760_v11  ;;  %v6889_v63 = vpack.c.bf16 %v652_v50, %v645_v41  ;;  %vm545_vm3 = vcmask 261120   ;;  %v4556_v25 = vlaneseq  ;;  %vm4552_vm11 = vcmask 261127  }
  0x12   :  { %6164 = vmatprep.subr.bf16.mxu0 %v6163_v52  ;;  %v6837_v56 = vpack.c.bf16 %v654_v55, %v647_v53  ;;  %vm4554_vm13 = vcmask 253952  }
  0x13   :  { %v6977_v30 = vshrl.u32 %v4556_v25, 7 }
  0x14   :  { %6190 = vmatpush3.bf16.msra.mxu1 %v6837_v56 }
  0x15   :  { %6191 = vmatprep.subr.bf16.mxu1 %v6705_v7  ;;  %v4572_v32 = vsub.s32 1, %v6977_v30  ;;  %vm4569_vm4 = vcmp.eq.s32.totalorder %v6977_v30, 1  ;;  %vm4558_vm5 = vcmp.eq.s32.totalorder %v6977_v30, 0  ;;  %vm4580_vm6 = vcmp.eq.s32.totalorder %v6977_v30, 2 }
  0x16   :  { %vm4591_vm7 = vcmp.eq.s32.totalorder %v6977_v30, 3  ;;  %vm4602_vm8 = vcmp.eq.s32.totalorder %v6977_v30, 4  ;;  %vm4613_vm9 = vcmp.eq.s32.totalorder %v6977_v30, 5  ;;  %vm4624_vm10 = vcmp.eq.s32.totalorder %v6977_v30, 6 }
  0x17   :  { %5531 = vmatmul.mubr.f32.vlgmr.msra.gmra.mrb[0].mxu0 %v6771_v16  ;;  %5581 = vmatmul.mubr.f32.vlgmr.msra.gmra.mrb[0].mxu1 %v6707_v51  ;;  %vm4635_vm12 = vcmp.eq.s32.totalorder %v6977_v30, 7 }
  0x18   :  { %6166 = vmatpush3.bf16.msra.mxu0 %v6163_v52  ;;  %5537 = vmatprep.mubr.f32.mxu0 %v6783_v20 }
  0x19   :  { %6168 = vmatprep.subr.bf16.mxu0 %v6769_v15  ;;  %6193 = vmatpush3.bf16.msra.mxu1 %v6842_v57 }
  0x1a   :  { %5591 = vmatprep.mubr.msk.f32.mxu1 %vm6706_vm1, %v6707_v51  ;;  %6194 = vmatprep.subr.bf16.mxu1 %v6705_v7 }
  0x1d   :  { %6196 = vmatpush3.bf16.msra.mxu1 %v6851_v58 }
  0x1e   :  { %6197 = vmatprep.subr.bf16.mxu1 %v6705_v7 }
  0x1f   :  { %5538 = vmatmul.mubr.f32.vlgmr.msra.gmra.mrb[0].mxu0 %v6797_v23 }
  0x20   :  { %6170 = vmatpush3.bf16.msra.mxu0 %v6769_v15  ;;  %5544 = vmatprep.mubr.f32.mxu0 %v112_v27 }
  0x21   :  { %5592 = vmatmul.mubr.f32.vlgmr.msra.gmra.mrb[0].mxu1 %v6707_v51  ;;  %6172 = vmatprep.subr.bf16.mxu0 %v6171_v59 }
  0x22   :  { %6199 = vmatpush3.bf16.msra.mxu1 %v6860_v60  ;;  %5602 = vmatprep.mubr.msk.f32.mxu1 %vm6706_vm1, %v6707_v51 }
  0x23   :  { %6200 = vmatprep.subr.bf16.mxu1 %v6705_v7 }
  0x26   :  { %6202 = vmatpush3.bf16.msra.mxu1 %v6869_v61 }
  0x27   :  { %6203 = vmatprep.subr.bf16.mxu1 %v6705_v7  ;;  %5545 = vmatmul.mubr.f32.vlgmr.msra.gmra.mrb[0].mxu0 %v122_v31  ;;  %v4561_v31 = vsub.s32 0, %v6977_v30 }
  0x28   :  { %6174 = vmatpush3.bf16.msra.mxu0 %v6171_v59  ;;  %5551 = vmatprep.mubr.f32.mxu0 %v6760_v11 }
  0x29   :  { %5603 = vmatmul.mubr.f32.vlgmr.msra.gmra.mrb[0].mxu1 %v6707_v51  ;;  %6176 = vmatprep.subr.bf16.mxu0 %v6769_v15 }
  0x2a   :  { %6205 = vmatpush3.bf16.msra.mxu1 %v6880_v62  ;;  %5613 = vmatprep.mubr.msk.f32.mxu1 %vm6706_vm1, %v6707_v51 }
  0x2b   :  { %6206 = vmatprep.subr.bf16.mxu1 %v6705_v7 }
  0x2e   :  { %6208 = vmatpush3.bf16.msra.mxu1 %v6889_v63 }
  0x2f   :  { %6209 = vmatprep.subr.bf16.mxu1 %v6705_v7  ;;  %5552 = vmatmul.mubr.f32.vlgmr.msra.gmra.mrb[0].mxu0 %v6771_v16 }
  0x30   :  { %6178 = vmatpush3.bf16.msra.mxu0 %v6769_v15  ;;  %5558 = vmatprep.mubr.f32.mxu0 %v6760_v11 }
  0x31   :  { %5614 = vmatmul.mubr.f32.vlgmr.msra.gmra.mrb[0].mxu1 %v6707_v51  ;;  %6179 = vmatprep.subr.bf16.mxu0 %v6705_v7 }
  0x32   :  { %6211 = vmatpush3.bf16.msra.mxu1 %v6860_v60  ;;  %5624 = vmatprep.mubr.msk.f32.mxu1 %vm6706_vm1, %v6707_v51 }
  0x33   :  { %6212 = vmatprep.subr.bf16.mxu1 %v6705_v7 }
  0x36   :  { %6214 = vmatpush3.bf16.msra.mxu1 %v6869_v61 }
  0x37   :  { %5559 = vmatmul.mubr.f32.vlgmr.msra.gmra.mrb[0].mxu0 %v6771_v16  ;;  %6251 = vmatprep.subr.bf16.mxu1 %v6705_v7 }
  0x38   :  { %6181 = vmatpush3.bf16.msra.mxu0 %v6860_v60  ;;  %5569 = vmatprep.mubr.msk.f32.mxu0 %vm6706_vm1, %v6707_v51 }
  0x39   :  { %5625 = vmatmul.mubr.f32.vlgmr.msra.gmra.mrb[0].mxu1 %v6707_v51  ;;  %6182 = vmatprep.subr.bf16.mxu0 %v6705_v7 }
  0x3a   :  { %6253 = vmatpush3.bf16.msra.mxu1 %v6860_v60  ;;  %5701 = vmatprep.mubr.msk.f32.mxu1 %vm6706_vm1, %v6707_v51 }
  0x3b   :  { %6254 = vmatprep.subr.bf16.mxu1 %v6705_v7 }
  0x3c   :  { %6184 = vmatpush3.bf16.msra.mxu0 %v6869_v61 }
  0x3d   :  { %6215 = vmatprep.subr.bf16.mxu0 %v6705_v7 }
  0x3e   :  { %6256 = vmatpush3.bf16.msra.mxu1 %v6869_v61 }
  0x3f   :  { %5570 = vmatmul.mubr.f32.vlgmr.msra.gmra.mrb[2].mxu0 %v6707_v51  ;;  %6257 = vmatprep.subr.bf16.mxu1 %v6705_v7 }
  0x40   :  { %6217 = vmatpush3.bf16.msra.mxu0 %v6860_v60  ;;  %5635 = vmatprep.mubr.msk.f32.mxu0 %vm6706_vm1, %v6707_v51 }
  0x41   :  { %6218 = vmatprep.subr.bf16.mxu0 %v6705_v7 }
  0x44   :  { %6220 = vmatpush3.bf16.msra.mxu0 %v6869_v61 }
  0x45   :  { %6221 = vmatprep.subr.bf16.mxu0 %v6705_v7 }
 0x10a   :  { %v5560_v0 = vpop.f32.mrb[0].mxu0 }
 0x10b   :  { %v535_v1 = vpop.f32.mrb[1].mxu0  ;;  %v6931_v9 = vadd.f32 %v5560_v0, %v5217_v4 }
 0x10c   :  { %v1030_v2 = vpop.f32.mrb[0].mxu1  ;;  %v6933_v10 = vadd.f32 %v5217_v4, %v535_v1 }
 0x10d   :  { %v5626_v3 = vpop.f32.mrb[1].mxu1 }
 0x112   :  { %v624_v5 = vpop.f32.mrb[2].mxu0 }
 0x113   :  { %v6517_v6 = vadd.f32 %v1030_v2, %v624_v5  ;;  %v5571_v8 = vpop.f32.mrb[3].mxu0  ;;  %v4583_v2 = vsub.s32 2, %v6977_v30 }
 0x115   :  { %v1035_v11 = vrot.slane %v6517_v6, 1  ;;  %v1038_v12 = vadd.f32 %v6517_v6, %v6933_v10 }
 0x117   :  { %v1039_v13 = vadd.f32 %v6931_v9, %v1035_v11 }
 0x119   :  { %6625 = vtanh.f32 %v1039_v13 }
 0x11a   :  { %6627 = vtanh.f32 %v1038_v12 }
 0x123   :  { %v6626_v14 = vpop.eup %6625 }
 0x124   :  { %v1044_v15 = vrot.slane %v6626_v14, 7  ;;  %v6628_v16 = vpop.eup %6627  ;;  %v4566_v33 = vrot.slane %v6626_v14, %v4561_v31 }
 0x125   :  { %v4562_v35 = vrot.slane %v6628_v16, %v4561_v31 }
 0x126   :  { %v1046_v17 = vsel %vm1045_vm2, %v1044_v15, %v6628_v16  ;;  %v4568_v38 = vsel %vm4558_vm5, %v4566_v33, 0.0 }
 0x127   :  { %v1047_v18 = vsel %vm545_vm3, %v1046_v17, 0  ;;  %v4567_v42 = vsel %vm4558_vm5, %v4562_v35, 0.0 }
 0x128   :  { %v1118_v19 = vand.u32 4294901760, %v1047_v18 }
 0x12a   :  { %v1119_v20 = vsub.f32 %v1047_v18, %v1118_v19 }
 0x12c   :  { %v1120_v21 = vand.u32 4294901760, %v1119_v20 }
 0x12e   :  { %v1121_v22 = vsub.f32 %v1119_v20, %v1120_v21 }
 0x130   :  { %v1122_v23 = vand.u32 4294901760, %v1121_v22 }
 0x132   :  { %5636 = vmatmul.mubr.f32.vlgmr.msra.gmra.mrb[4].mxu0 %v1122_v23 }
 0x133   :  { %6223 = vmatpush3.bf16.msra.mxu0 %v6828_v49  ;;  %5646 = vmatprep.mubr.msk.f32.mxu0 %vm6706_vm1, %v6707_v51 }
 0x134   :  { %6224 = vmatprep.subr.bf16.mxu0 %v6705_v7 }
 0x137   :  { %6226 = vmatpush3.bf16.msra.mxu0 %v6837_v56 }
 0x138   :  { %6227 = vmatprep.subr.bf16.mxu0 %v6705_v7 }
 0x13a   :  { %5647 = vmatmul.mubr.f32.vlgmr.msra.gmra.mrb[4].mxu0 %v1118_v19 }
 0x13b   :  { %6229 = vmatpush3.bf16.msra.mxu0 %v6842_v57  ;;  %5657 = vmatprep.mubr.msk.f32.mxu0 %vm6706_vm1, %v6707_v51 }
 0x13c   :  { %6230 = vmatprep.subr.bf16.mxu0 %v6705_v7 }
 0x13f   :  { %6232 = vmatpush3.bf16.msra.mxu0 %v6851_v58 }
 0x140   :  { %6233 = vmatprep.subr.bf16.mxu0 %v6705_v7 }
 0x142   :  { %5658 = vmatmul.mubr.f32.vlgmr.msra.gmra.mrb[4].mxu0 %v1119_v20 }
 0x143   :  { %6235 = vmatpush3.bf16.msra.mxu0 %v6860_v60  ;;  %5668 = vmatprep.mubr.msk.f32.mxu0 %vm6706_vm1, %v6707_v51 }
 0x144   :  { %6236 = vmatprep.subr.bf16.mxu0 %v6705_v7 }
 0x147   :  { %6238 = vmatpush3.bf16.msra.mxu0 %v6869_v61 }
 0x148   :  { %6239 = vmatprep.subr.bf16.mxu0 %v6705_v7 }
 0x14a   :  { %5669 = vmatmul.mubr.f32.vlgmr.msra.gmra.mrb[4].mxu0 %v1120_v21 }
 0x14b   :  { %6241 = vmatpush3.bf16.msra.mxu0 %v6880_v62  ;;  %5679 = vmatprep.mubr.msk.f32.mxu0 %vm6706_vm1, %v6707_v51 }
 0x14c   :  { %6242 = vmatprep.subr.bf16.mxu0 %v6705_v7 }
 0x14f   :  { %6244 = vmatpush3.bf16.msra.mxu0 %v6889_v63 }
 0x150   :  { %6245 = vmatprep.subr.bf16.mxu0 %v6705_v7 }
 0x152   :  { %5680 = vmatmul.mubr.f32.vlgmr.msra.gmra.mrb[4].mxu0 %v1118_v19 }
 0x153   :  { %6247 = vmatpush3.bf16.msra.mxu0 %v6860_v60  ;;  %5690 = vmatprep.mubr.msk.f32.mxu0 %vm6706_vm1, %v6707_v51 }
 0x154   :  { %6248 = vmatprep.subr.bf16.mxu0 %v6705_v7 }
 0x157   :  { %6250 = vmatpush3.bf16.msra.mxu0 %v6869_v61 }
 0x158   :  { %6287 = vmatprep.subr.bf16.mxu0 %v6705_v7 }
 0x15a   :  { %5691 = vmatmul.mubr.f32.vlgmr.msra.gmra.mrb[4].mxu0 %v1118_v19 }
 0x15b   :  { %6289 = vmatpush3.bf16.msra.mxu0 %v6860_v60  ;;  %5767 = vmatprep.mubr.msk.f32.mxu0 %vm6706_vm1, %v6707_v51 }
 0x15c   :  { %6290 = vmatprep.subr.bf16.mxu0 %v6705_v7 }
 0x15f   :  { %6292 = vmatpush3.bf16.msra.mxu0 %v6869_v61 }
 0x160   :  { %6293 = vmatprep.subr.bf16.mxu0 %v6705_v7 }
 0x22d   :  { %v1530_v24 = vpop.f32.mrb[4].mxu0 }
 0x22e   :  { %v1535_v26 = vrot.slane %v1530_v24, 7  ;;  %v1539_v27 = vadd.f32 %v6931_v9, %v1530_v24  ;;  %v5692_v28 = vpop.f32.mrb[5].mxu0 }
 0x230   :  { %v1538_v29 = vadd.f32 %v6933_v10, %v1535_v26  ;;  %6629 = vtanh.f32 %v1539_v27  ;;  %v4594_v27 = vsub.s32 3, %v6977_v30 }
 0x232   :  { %6631 = vtanh.f32 %v1538_v29 }
 0x23a   :  { %v6630_v34 = vpop.eup %6629 }
 0x23b   :  { %v4577_v36 = vrot.slane %v6630_v34, %v4572_v32 }
 0x23c   :  { %v6632_v37 = vpop.eup %6631 }
 0x23d   :  { %v1544_v39 = vrot.slane %v6632_v37, 1  ;;  %v4573_v40 = vrot.slane %v6632_v37, %v4572_v32  ;;  %v6983_v41 = vsel %vm4569_vm4, %v4577_v36, %v4568_v38 }
 0x23f   :  { %v4578_v43 = vsel %vm4569_vm4, %v4573_v40, %v4567_v42  ;;  %v1545_v44 = vsel %vm1045_vm2, %v6630_v34, %v1544_v39 }
 0x240   :  { %v1546_v45 = vsel %vm545_vm3, %v1545_v44, 0 }
 0x241   :  { %v1617_v46 = vand.u32 4294901760, %v1546_v45 }
 0x243   :  { %v1618_v47 = vsub.f32 %v1546_v45, %v1617_v46 }
 0x245   :  { %v1619_v48 = vand.u32 4294901760, %v1618_v47 }
 0x247   :  { %v1620_v50 = vsub.f32 %v1618_v47, %v1619_v48 }
 0x249   :  { %v1621_v52 = vand.u32 4294901760, %v1620_v50 }
 0x24b   :  { %5702 = vmatmul.mubr.f32.vlgmr.msra.gmra.mrb[2].mxu1 %v1621_v52  ;;  %v4605_v52 = vsub.s32 4, %v6977_v30 }
 0x24c   :  { %6259 = vmatpush3.bf16.msra.mxu1 %v6828_v49  ;;  %5712 = vmatprep.mubr.msk.f32.mxu1 %vm6706_vm1, %v6707_v51 }
 0x24d   :  { %6260 = vmatprep.subr.bf16.mxu1 %v6705_v7 }
 0x250   :  { %6262 = vmatpush3.bf16.msra.mxu1 %v6837_v56 }
 0x251   :  { %6263 = vmatprep.subr.bf16.mxu1 %v6705_v7 }
 0x253   :  { %5713 = vmatmul.mubr.f32.vlgmr.msra.gmra.mrb[2].mxu1 %v1617_v46 }
 0x254   :  { %6265 = vmatpush3.bf16.msra.mxu1 %v6842_v57  ;;  %5723 = vmatprep.mubr.msk.f32.mxu1 %vm6706_vm1, %v6707_v51 }
 0x255   :  { %6266 = vmatprep.subr.bf16.mxu1 %v6705_v7 }
 0x258   :  { %6268 = vmatpush3.bf16.msra.mxu1 %v6851_v58 }
 0x259   :  { %6269 = vmatprep.subr.bf16.mxu1 %v6705_v7 }
 0x25b   :  { %5724 = vmatmul.mubr.f32.vlgmr.msra.gmra.mrb[2].mxu1 %v1618_v47 }
 0x25c   :  { %6271 = vmatpush3.bf16.msra.mxu1 %v6860_v60  ;;  %5734 = vmatprep.mubr.msk.f32.mxu1 %vm6706_vm1, %v6707_v51 }
 0x25d   :  { %6272 = vmatprep.subr.bf16.mxu1 %v6705_v7 }
 0x260   :  { %6274 = vmatpush3.bf16.msra.mxu1 %v6869_v61 }
 0x261   :  { %6275 = vmatprep.subr.bf16.mxu1 %v6705_v7 }
 0x263   :  { %5735 = vmatmul.mubr.f32.vlgmr.msra.gmra.mrb[2].mxu1 %v1619_v48 }
 0x264   :  { %6277 = vmatpush3.bf16.msra.mxu1 %v6880_v62  ;;  %5745 = vmatprep.mubr.msk.f32.mxu1 %vm6706_vm1, %v6707_v51 }
 0x265   :  { %6278 = vmatprep.subr.bf16.mxu1 %v6705_v7 }
 0x268   :  { %6280 = vmatpush3.bf16.msra.mxu1 %v6889_v63 }
 0x269   :  { %6281 = vmatprep.subr.bf16.mxu1 %v6705_v7 }
 0x26b   :  { %5746 = vmatmul.mubr.f32.vlgmr.msra.gmra.mrb[2].mxu1 %v1617_v46 }
 0x26c   :  { %6283 = vmatpush3.bf16.msra.mxu1 %v6860_v60  ;;  %5756 = vmatprep.mubr.msk.f32.mxu1 %vm6706_vm1, %v6707_v51 }
 0x26d   :  { %6284 = vmatprep.subr.bf16.mxu1 %v6705_v7 }
 0x270   :  { %6286 = vmatpush3.bf16.msra.mxu1 %v6869_v61 }
 0x271   :  { %6323 = vmatprep.subr.bf16.mxu1 %v6705_v7 }
 0x273   :  { %5757 = vmatmul.mubr.f32.vlgmr.msra.gmra.mrb[2].mxu1 %v1617_v46 }
 0x274   :  { %6325 = vmatpush3.bf16.msra.mxu1 %v6860_v60  ;;  %5833 = vmatprep.mubr.msk.f32.mxu1 %vm6706_vm1, %v6707_v51 }
 0x275   :  { %6326 = vmatprep.subr.bf16.mxu1 %v6705_v7 }
 0x278   :  { %6328 = vmatpush3.bf16.msra.mxu1 %v6869_v61 }
 0x279   :  { %6329 = vmatprep.subr.bf16.mxu1 %v6705_v7 }
 0x346   :  { %v2029_v53 = vpop.f32.mrb[2].mxu1 }
 0x347   :  { %v2034_v54 = vrot.slane %v2029_v53, 6  ;;  %v2035_v55 = vrot.slane %v2029_v53, 7  ;;  %v5758_v59 = vpop.f32.mrb[3].mxu1 }
 0x349   :  { %v2038_v0 = vadd.f32 %v6933_v10, %v2034_v54  ;;  %v2039_v1 = vadd.f32 %v6931_v9, %v2035_v55 }
 0x34b   :  { %6633 = vtanh.f32 %v2038_v0 }
 0x34c   :  { %6635 = vtanh.f32 %v2039_v1 }
 0x355   :  { %v6634_v3 = vpop.eup %6633 }
 0x356   :  { %v6636_v4 = vpop.eup %6635  ;;  %v2044_v5 = vrot.slane %v6634_v3, 2  ;;  %v4584_v6 = vrot.slane %v6634_v3, %v4583_v2 }
 0x357   :  { %v2045_v8 = vrot.slane %v6636_v4, 1  ;;  %v4588_v11 = vrot.slane %v6636_v4, %v4583_v2 }
 0x358   :  { %v4589_v12 = vsel %vm4580_vm6, %v4584_v6, %v4578_v43 }
 0x359   :  { %v4590_v13 = vsel %vm4580_vm6, %v4588_v11, %v6983_v41  ;;  %v2046_v14 = vsel %vm1045_vm2, %v2045_v8, %v2044_v5 }
 0x35a   :  { %v2047_v15 = vsel %vm545_vm3, %v2046_v14, 0 }
 0x35b   :  { %v2118_v16 = vand.u32 4294901760, %v2047_v15 }
 0x35d   :  { %v2119_v17 = vsub.f32 %v2047_v15, %v2118_v16 }
 0x35f   :  { %v2120_v18 = vand.u32 4294901760, %v2119_v17 }
 0x361   :  { %v2121_v19 = vsub.f32 %v2119_v17, %v2120_v18 }
 0x363   :  { %v2122_v20 = vand.u32 4294901760, %v2121_v19 }
 0x365   :  { %5768 = vmatmul.mubr.f32.vlgmr.msra.gmra.mrb[6].mxu0 %v2122_v20  ;;  %v4616_v20 = vsub.s32 5, %v6977_v30 }
 0x366   :  { %6295 = vmatpush3.bf16.msra.mxu0 %v6828_v49  ;;  %5778 = vmatprep.mubr.msk.f32.mxu0 %vm6706_vm1, %v6707_v51 }
 0x367   :  { %6296 = vmatprep.subr.bf16.mxu0 %v6705_v7 }
 0x36a   :  { %6298 = vmatpush3.bf16.msra.mxu0 %v6837_v56 }
 0x36b   :  { %6299 = vmatprep.subr.bf16.mxu0 %v6705_v7 }
 0x36d   :  { %5779 = vmatmul.mubr.f32.vlgmr.msra.gmra.mrb[6].mxu0 %v2118_v16 }
 0x36e   :  { %6301 = vmatpush3.bf16.msra.mxu0 %v6842_v57  ;;  %5789 = vmatprep.mubr.msk.f32.mxu0 %vm6706_vm1, %v6707_v51 }
 0x36f   :  { %6302 = vmatprep.subr.bf16.mxu0 %v6705_v7 }
 0x372   :  { %6304 = vmatpush3.bf16.msra.mxu0 %v6851_v58 }
 0x373   :  { %6305 = vmatprep.subr.bf16.mxu0 %v6705_v7 }
 0x375   :  { %5790 = vmatmul.mubr.f32.vlgmr.msra.gmra.mrb[6].mxu0 %v2119_v17 }
 0x376   :  { %6307 = vmatpush3.bf16.msra.mxu0 %v6860_v60  ;;  %5800 = vmatprep.mubr.msk.f32.mxu0 %vm6706_vm1, %v6707_v51 }
 0x377   :  { %6308 = vmatprep.subr.bf16.mxu0 %v6705_v7 }
 0x37a   :  { %6310 = vmatpush3.bf16.msra.mxu0 %v6869_v61 }
 0x37b   :  { %6311 = vmatprep.subr.bf16.mxu0 %v6705_v7 }
 0x37d   :  { %5801 = vmatmul.mubr.f32.vlgmr.msra.gmra.mrb[6].mxu0 %v2120_v18 }
 0x37e   :  { %6313 = vmatpush3.bf16.msra.mxu0 %v6880_v62  ;;  %5811 = vmatprep.mubr.msk.f32.mxu0 %vm6706_vm1, %v6707_v51 }
 0x37f   :  { %6314 = vmatprep.subr.bf16.mxu0 %v6705_v7 }
 0x382   :  { %6316 = vmatpush3.bf16.msra.mxu0 %v6889_v63 }
 0x383   :  { %6317 = vmatprep.subr.bf16.mxu0 %v6705_v7 }
 0x385   :  { %5812 = vmatmul.mubr.f32.vlgmr.msra.gmra.mrb[6].mxu0 %v2118_v16 }
 0x386   :  { %6319 = vmatpush3.bf16.msra.mxu0 %v6860_v60  ;;  %5822 = vmatprep.mubr.msk.f32.mxu0 %vm6706_vm1, %v6707_v51 }
 0x387   :  { %6320 = vmatprep.subr.bf16.mxu0 %v6705_v7 }
 0x38a   :  { %6322 = vmatpush3.bf16.msra.mxu0 %v6869_v61 }
 0x38b   :  { %6359 = vmatprep.subr.bf16.mxu0 %v6705_v7 }
 0x38d   :  { %5823 = vmatmul.mubr.f32.vlgmr.msra.gmra.mrb[6].mxu0 %v2118_v16 }
 0x38e   :  { %6361 = vmatpush3.bf16.msra.mxu0 %v6860_v60  ;;  %5899 = vmatprep.mubr.msk.f32.mxu0 %vm6706_vm1, %v6707_v51 }
 0x38f   :  { %6362 = vmatprep.subr.bf16.mxu0 %v6705_v7 }
 0x392   :  { %6364 = vmatpush3.bf16.msra.mxu0 %v6869_v61 }
 0x393   :  { %6365 = vmatprep.subr.bf16.mxu0 %v6705_v7 }
 0x460   :  { %v2530_v21 = vpop.f32.mrb[6].mxu0 }
 0x461   :  { %v2535_v22 = vrot.slane %v2530_v21, 5  ;;  %v2536_v23 = vrot.slane %v2530_v21, 6  ;;  %v5824_v24 = vpop.f32.mrb[7].mxu0 }
 0x463   :  { %v2539_v25 = vadd.f32 %v6933_v10, %v2535_v22  ;;  %v2540_v26 = vadd.f32 %v6931_v9, %v2536_v23 }
 0x465   :  { %6637 = vtanh.f32 %v2539_v25 }
 0x466   :  { %6639 = vtanh.f32 %v2540_v26 }
 0x46f   :  { %v6638_v28 = vpop.eup %6637 }
 0x470   :  { %v6640_v29 = vpop.eup %6639  ;;  %v2545_v31 = vrot.slane %v6638_v28, 3  ;;  %v4595_v32 = vrot.slane %v6638_v28, %v4594_v27 }
 0x471   :  { %v2546_v33 = vrot.slane %v6640_v29, 2  ;;  %v4599_v34 = vrot.slane %v6640_v29, %v4594_v27 }
 0x472   :  { %v4600_v35 = vsel %vm4591_vm7, %v4595_v32, %v4589_v12 }
 0x473   :  { %v4601_v36 = vsel %vm4591_vm7, %v4599_v34, %v4590_v13  ;;  %v2547_v37 = vsel %vm1045_vm2, %v2546_v33, %v2545_v31 }
 0x474   :  { %v2548_v38 = vsel %vm545_vm3, %v2547_v37, 0 }
 0x475   :  { %v2619_v39 = vand.u32 4294901760, %v2548_v38 }
 0x477   :  { %v2620_v40 = vsub.f32 %v2548_v38, %v2619_v39 }
 0x479   :  { %v2621_v41 = vand.u32 4294901760, %v2620_v40 }
 0x47b   :  { %v2622_v42 = vsub.f32 %v2620_v40, %v2621_v41 }
 0x47d   :  { %v2623_v43 = vand.u32 4294901760, %v2622_v42 }
 0x47f   :  { %5834 = vmatmul.mubr.f32.vlgmr.msra.gmra.mrb[4].mxu1 %v2623_v43  ;;  %v4627_v43 = vsub.s32 6, %v6977_v30 }
 0x480   :  { %6331 = vmatpush3.bf16.msra.mxu1 %v6828_v49  ;;  %5844 = vmatprep.mubr.msk.f32.mxu1 %vm6706_vm1, %v6707_v51 }
 0x481   :  { %6332 = vmatprep.subr.bf16.mxu1 %v6705_v7 }
 0x484   :  { %6334 = vmatpush3.bf16.msra.mxu1 %v6837_v56 }
 0x485   :  { %6335 = vmatprep.subr.bf16.mxu1 %v6705_v7 }
 0x487   :  { %5845 = vmatmul.mubr.f32.vlgmr.msra.gmra.mrb[4].mxu1 %v2619_v39 }
 0x488   :  { %6337 = vmatpush3.bf16.msra.mxu1 %v6842_v57  ;;  %5855 = vmatprep.mubr.msk.f32.mxu1 %vm6706_vm1, %v6707_v51 }
 0x489   :  { %6338 = vmatprep.subr.bf16.mxu1 %v6705_v7 }
 0x48c   :  { %6340 = vmatpush3.bf16.msra.mxu1 %v6851_v58 }
 0x48d   :  { %6341 = vmatprep.subr.bf16.mxu1 %v6705_v7 }
 0x48f   :  { %5856 = vmatmul.mubr.f32.vlgmr.msra.gmra.mrb[4].mxu1 %v2620_v40 }
 0x490   :  { %6343 = vmatpush3.bf16.msra.mxu1 %v6860_v60  ;;  %5866 = vmatprep.mubr.msk.f32.mxu1 %vm6706_vm1, %v6707_v51 }
 0x491   :  { %6344 = vmatprep.subr.bf16.mxu1 %v6705_v7 }
 0x494   :  { %6346 = vmatpush3.bf16.msra.mxu1 %v6869_v61 }
 0x495   :  { %6347 = vmatprep.subr.bf16.mxu1 %v6705_v7 }
 0x497   :  { %5867 = vmatmul.mubr.f32.vlgmr.msra.gmra.mrb[4].mxu1 %v2621_v41 }
 0x498   :  { %6349 = vmatpush3.bf16.msra.mxu1 %v6880_v62  ;;  %5877 = vmatprep.mubr.msk.f32.mxu1 %vm6706_vm1, %v6707_v51 }
 0x499   :  { %6350 = vmatprep.subr.bf16.mxu1 %v6705_v7 }
 0x49c   :  { %6352 = vmatpush3.bf16.msra.mxu1 %v6889_v63 }
 0x49d   :  { %6353 = vmatprep.subr.bf16.mxu1 %v6705_v7 }
 0x49f   :  { %5878 = vmatmul.mubr.f32.vlgmr.msra.gmra.mrb[4].mxu1 %v2619_v39 }
 0x4a0   :  { %6355 = vmatpush3.bf16.msra.mxu1 %v6860_v60  ;;  %5888 = vmatprep.mubr.msk.f32.mxu1 %vm6706_vm1, %v6707_v51 }
 0x4a1   :  { %6356 = vmatprep.subr.bf16.mxu1 %v6705_v7 }
 0x4a4   :  { %6358 = vmatpush3.bf16.msra.mxu1 %v6869_v61 }
 0x4a5   :  { %6395 = vmatprep.subr.bf16.mxu1 %v6705_v7 }
 0x4a7   :  { %5889 = vmatmul.mubr.f32.vlgmr.msra.gmra.mrb[4].mxu1 %v2619_v39 }
 0x4a8   :  { %6397 = vmatpush3.bf16.msra.mxu1 %v6860_v60  ;;  %5965 = vmatprep.mubr.msk.f32.mxu1 %vm6706_vm1, %v6707_v51 }
 0x4a9   :  { %6398 = vmatprep.subr.bf16.mxu1 %v6705_v7 }
 0x4ac   :  { %6400 = vmatpush3.bf16.msra.mxu1 %v6869_v61 }
 0x4ad   :  { %6401 = vmatprep.subr.bf16.mxu1 %v6705_v7 }
 0x57a   :  { %v3031_v44 = vpop.f32.mrb[4].mxu1 }
 0x57b   :  { %v3036_v45 = vrot.slane %v3031_v44, 4  ;;  %v3037_v46 = vrot.slane %v3031_v44, 5  ;;  %v5890_v47 = vpop.f32.mrb[5].mxu1 }
 0x57d   :  { %v3040_v48 = vadd.f32 %v6933_v10, %v3036_v45  ;;  %v3041_v50 = vadd.f32 %v6931_v9, %v3037_v46 }
 0x57f   :  { %6641 = vtanh.f32 %v3040_v48 }
 0x580   :  { %6643 = vtanh.f32 %v3041_v50 }
 0x589   :  { %v6642_v53 = vpop.eup %6641 }
 0x58a   :  { %v6644_v54 = vpop.eup %6643  ;;  %v3046_v55 = vrot.slane %v6642_v53, 4  ;;  %v4606_v59 = vrot.slane %v6642_v53, %v4605_v52 }
 0x58b   :  { %v3047_v0 = vrot.slane %v6644_v54, 3  ;;  %v4610_v1 = vrot.slane %v6644_v54, %v4605_v52 }
 0x58c   :  { %v4611_v2 = vsel %vm4602_vm8, %v4606_v59, %v4600_v35 }
 0x58d   :  { %v7112_v3 = vsel %vm4602_vm8, %v4610_v1, %v4601_v36  ;;  %v3048_v4 = vsel %vm1045_vm2, %v3047_v0, %v3046_v55 }
 0x58e   :  { %v3049_v5 = vsel %vm545_vm3, %v3048_v4, 0 }
 0x58f   :  { %v3120_v6 = vand.u32 4294901760, %v3049_v5 }
 0x591   :  { %v3121_v8 = vsub.f32 %v3049_v5, %v3120_v6 }
 0x593   :  { %v3122_v11 = vand.u32 4294901760, %v3121_v8 }
 0x595   :  { %v3123_v12 = vsub.f32 %v3121_v8, %v3122_v11 }
 0x597   :  { %v3124_v13 = vand.u32 4294901760, %v3123_v12 }
 0x599   :  { %5900 = vmatmul.mubr.f32.vlgmr.msra.gmra.mrb[8].mxu0 %v3124_v13 }
 0x59a   :  { %6367 = vmatpush3.bf16.msra.mxu0 %v6828_v49  ;;  %5910 = vmatprep.mubr.msk.f32.mxu0 %vm6706_vm1, %v6707_v51 }
 0x59b   :  { %6368 = vmatprep.subr.bf16.mxu0 %v6705_v7 }
 0x59e   :  { %6370 = vmatpush3.bf16.msra.mxu0 %v6837_v56 }
 0x59f   :  { %6371 = vmatprep.subr.bf16.mxu0 %v6705_v7 }
 0x5a1   :  { %5911 = vmatmul.mubr.f32.vlgmr.msra.gmra.mrb[8].mxu0 %v3120_v6 }
 0x5a2   :  { %6373 = vmatpush3.bf16.msra.mxu0 %v6842_v57  ;;  %5921 = vmatprep.mubr.msk.f32.mxu0 %vm6706_vm1, %v6707_v51 }
 0x5a3   :  { %6374 = vmatprep.subr.bf16.mxu0 %v6705_v7 }
 0x5a6   :  { %6376 = vmatpush3.bf16.msra.mxu0 %v6851_v58 }
 0x5a7   :  { %6377 = vmatprep.subr.bf16.mxu0 %v6705_v7 }
 0x5a9   :  { %5922 = vmatmul.mubr.f32.vlgmr.msra.gmra.mrb[8].mxu0 %v3121_v8 }
 0x5aa   :  { %6379 = vmatpush3.bf16.msra.mxu0 %v6860_v60  ;;  %5932 = vmatprep.mubr.msk.f32.mxu0 %vm6706_vm1, %v6707_v51 }
 0x5ab   :  { %6380 = vmatprep.subr.bf16.mxu0 %v6705_v7 }
 0x5ae   :  { %6382 = vmatpush3.bf16.msra.mxu0 %v6869_v61 }
 0x5af   :  { %6383 = vmatprep.subr.bf16.mxu0 %v6705_v7 }
 0x5b1   :  { %5933 = vmatmul.mubr.f32.vlgmr.msra.gmra.mrb[8].mxu0 %v3122_v11 }
 0x5b2   :  { %6385 = vmatpush3.bf16.msra.mxu0 %v6880_v62  ;;  %5943 = vmatprep.mubr.msk.f32.mxu0 %vm6706_vm1, %v6707_v51 }
 0x5b3   :  { %6386 = vmatprep.subr.bf16.mxu0 %v6705_v7 }
 0x5b6   :  { %6388 = vmatpush3.bf16.msra.mxu0 %v6889_v63 }
 0x5b7   :  { %6389 = vmatprep.subr.bf16.mxu0 %v6705_v7 }
 0x5b9   :  { %5944 = vmatmul.mubr.f32.vlgmr.msra.gmra.mrb[8].mxu0 %v3120_v6 }
 0x5ba   :  { %6391 = vmatpush3.bf16.msra.mxu0 %v6860_v60  ;;  %5954 = vmatprep.mubr.msk.f32.mxu0 %vm6706_vm1, %v6707_v51 }
 0x5bb   :  { %6392 = vmatprep.subr.bf16.mxu0 %v6705_v7 }
 0x5be   :  { %6394 = vmatpush3.bf16.msra.mxu0 %v6869_v61 }
 0x5bf   :  { %6431 = vmatprep.subr.bf16.mxu0 %v6705_v7 }
 0x5c1   :  { %5955 = vmatmul.mubr.f32.vlgmr.msra.gmra.mrb[8].mxu0 %v3120_v6 }
 0x5c2   :  { %6433 = vmatpush3.bf16.msra.mxu0 %v6860_v60  ;;  %6031 = vmatprep.mubr.msk.f32.mxu0 %vm6706_vm1, %v6707_v51 }
 0x5c3   :  { %6434 = vmatprep.subr.bf16.mxu0 %v6705_v7 }
 0x5c6   :  { %6436 = vmatpush3.bf16.msra.mxu0 %v6869_v61 }
 0x5c7   :  { %6437 = vmatprep.subr.bf16.mxu0 %v6705_v7 }
 0x694   :  { %v3532_v14 = vpop.f32.mrb[8].mxu0 }
 0x695   :  { %v3537_v15 = vrot.slane %v3532_v14, 3  ;;  %v3538_v16 = vrot.slane %v3532_v14, 4  ;;  %v5956_v17 = vpop.f32.mrb[9].mxu0 }
 0x697   :  { %v3541_v18 = vadd.f32 %v6933_v10, %v3537_v15  ;;  %v3542_v19 = vadd.f32 %v6931_v9, %v3538_v16 }
 0x699   :  { %6645 = vtanh.f32 %v3541_v18 }
 0x69a   :  { %6647 = vtanh.f32 %v3542_v19 }
 0x6a3   :  { %v6646_v21 = vpop.eup %6645 }
 0x6a4   :  { %v6648_v22 = vpop.eup %6647  ;;  %v3547_v23 = vrot.slane %v6646_v21, 5  ;;  %v4617_v24 = vrot.slane %v6646_v21, %v4616_v20 }
 0x6a5   :  { %v3548_v25 = vrot.slane %v6648_v22, 4  ;;  %v4621_v26 = vrot.slane %v6648_v22, %v4616_v20 }
 0x6a6   :  { %v4622_v27 = vsel %vm4613_vm9, %v4617_v24, %v4611_v2 }
 0x6a7   :  { %v3549_v28 = vsel %vm1045_vm2, %v3548_v25, %v3547_v23  ;;  %v4623_v29 = vsel %vm4613_vm9, %v4621_v26, %v7112_v3 }
 0x6a8   :  { %v3550_v31 = vsel %vm545_vm3, %v3549_v28, 0 }
 0x6a9   :  { %v3621_v32 = vand.u32 4294901760, %v3550_v31 }
 0x6ab   :  { %v3622_v33 = vsub.f32 %v3550_v31, %v3621_v32 }
 0x6ad   :  { %v3623_v34 = vand.u32 4294901760, %v3622_v33 }
 0x6af   :  { %v3624_v35 = vsub.f32 %v3622_v33, %v3623_v34 }
 0x6b1   :  { %v3625_v36 = vand.u32 4294901760, %v3624_v35 }
 0x6b3   :  { %5966 = vmatmul.mubr.f32.vlgmr.msra.gmra.mrb[6].mxu1 %v3625_v36  ;;  %v4638_v36 = vsub.s32 7, %v6977_v30 }
 0x6b4   :  { %6403 = vmatpush3.bf16.msra.mxu1 %v6828_v49  ;;  %5976 = vmatprep.mubr.msk.f32.mxu1 %vm6706_vm1, %v6707_v51 }
 0x6b5   :  { %6404 = vmatprep.subr.bf16.mxu1 %v6705_v7 }
 0x6b8   :  { %6406 = vmatpush3.bf16.msra.mxu1 %v6837_v56 }
 0x6b9   :  { %6407 = vmatprep.subr.bf16.mxu1 %v6705_v7 }
 0x6bb   :  { %5977 = vmatmul.mubr.f32.vlgmr.msra.gmra.mrb[6].mxu1 %v3621_v32 }
 0x6bc   :  { %6409 = vmatpush3.bf16.msra.mxu1 %v6842_v57  ;;  %5987 = vmatprep.mubr.msk.f32.mxu1 %vm6706_vm1, %v6707_v51 }
 0x6bd   :  { %6410 = vmatprep.subr.bf16.mxu1 %v6705_v7 }
 0x6c0   :  { %6412 = vmatpush3.bf16.msra.mxu1 %v6851_v58 }
 0x6c1   :  { %6413 = vmatprep.subr.bf16.mxu1 %v6705_v7 }
 0x6c3   :  { %5988 = vmatmul.mubr.f32.vlgmr.msra.gmra.mrb[6].mxu1 %v3622_v33 }
 0x6c4   :  { %6415 = vmatpush3.bf16.msra.mxu1 %v6860_v60  ;;  %5998 = vmatprep.mubr.msk.f32.mxu1 %vm6706_vm1, %v6707_v51 }
 0x6c5   :  { %6416 = vmatprep.subr.bf16.mxu1 %v6705_v7 }
 0x6c8   :  { %6418 = vmatpush3.bf16.msra.mxu1 %v6869_v61 }
 0x6c9   :  { %6419 = vmatprep.subr.bf16.mxu1 %v6705_v7 }
 0x6cb   :  { %5999 = vmatmul.mubr.f32.vlgmr.msra.gmra.mrb[6].mxu1 %v3623_v34 }
 0x6cc   :  { %6421 = vmatpush3.bf16.msra.mxu1 %v6880_v62  ;;  %6009 = vmatprep.mubr.msk.f32.mxu1 %vm6706_vm1, %v6707_v51 }
 0x6cd   :  { %6422 = vmatprep.subr.bf16.mxu1 %v6705_v7 }
 0x6d0   :  { %6424 = vmatpush3.bf16.msra.mxu1 %v6889_v63 }
 0x6d1   :  { %6425 = vmatprep.subr.bf16.mxu1 %v6705_v7 }
 0x6d3   :  { %6010 = vmatmul.mubr.f32.vlgmr.msra.gmra.mrb[6].mxu1 %v3621_v32 }
 0x6d4   :  { %6427 = vmatpush3.bf16.msra.mxu1 %v6860_v60  ;;  %6020 = vmatprep.mubr.msk.f32.mxu1 %vm6706_vm1, %v6707_v51 }
 0x6d5   :  { %6428 = vmatprep.subr.bf16.mxu1 %v6705_v7 }
 0x6d8   :  { %6430 = vmatpush3.bf16.msra.mxu1 %v6869_v61 }
 0x6db   :  { %6021 = vmatmul.mubr.f32.vlgmr.msra.gmra.mrb[6].mxu1 %v3621_v32 }
 0x7ae   :  { %v4033_v37 = vpop.f32.mrb[6].mxu1 }
 0x7af   :  { %v4038_v38 = vrot.slane %v4033_v37, 2  ;;  %v4039_v39 = vrot.slane %v4033_v37, 3  ;;  %v6022_v40 = vpop.f32.mrb[7].mxu1 }
 0x7b1   :  { %v4042_v41 = vadd.f32 %v6933_v10, %v4038_v38  ;;  %v4043_v42 = vadd.f32 %v6931_v9, %v4039_v39 }
 0x7b3   :  { %6649 = vtanh.f32 %v4042_v41 }
 0x7b4   :  { %6651 = vtanh.f32 %v4043_v42 }
 0x7bd   :  { %v6650_v44 = vpop.eup %6649 }
 0x7be   :  { %v6652_v45 = vpop.eup %6651  ;;  %v4048_v46 = vrot.slane %v6650_v44, 6  ;;  %v4628_v47 = vrot.slane %v6650_v44, %v4627_v43 }
 0x7bf   :  { %v4049_v48 = vrot.slane %v6652_v45, 5  ;;  %v4632_v50 = vrot.slane %v6652_v45, %v4627_v43 }
 0x7c0   :  { %v7192_v52 = vsel %vm4624_vm10, %v4628_v47, %v4622_v27 }
 0x7c1   :  { %v4050_v53 = vsel %vm1045_vm2, %v4049_v48, %v4048_v46  ;;  %v7195_v54 = vsel %vm4624_vm10, %v4632_v50, %v4623_v29 }
 0x7c2   :  { %v4051_v55 = vsel %vm545_vm3, %v4050_v53, 0 }
 0x7c3   :  { %v4122_v59 = vand.u32 4294901760, %v4051_v55 }
 0x7c5   :  { %v4123_v0 = vsub.f32 %v4051_v55, %v4122_v59 }
 0x7c7   :  { %v4124_v1 = vand.u32 4294901760, %v4123_v0 }
 0x7c9   :  { %v4125_v2 = vsub.f32 %v4123_v0, %v4124_v1 }
 0x7cb   :  { %v4126_v3 = vand.u32 4294901760, %v4125_v2 }
 0x7cd   :  { %6032 = vmatmul.mubr.f32.vlgmr.msra.gmra.mrb[10].mxu0 %v4126_v3 }
 0x7ce   :  { %6439 = vmatpush3.bf16.msra.mxu0 %v6828_v49  ;;  %6042 = vmatprep.mubr.msk.f32.mxu0 %vm6706_vm1, %v6707_v51  ;;  %v25_v49 = vld [vmem:[%s7292_s2] sm:$0xff] }
 0x7cf   :  { %6440 = vmatprep.subr.bf16.mxu0 %v6705_v7 }
 0x7d2   :  { %6442 = vmatpush3.bf16.msra.mxu0 %v6837_v56  ;;  %v26_v56 = vld [vmem:[%s7292_s2 + $0x8] sm:$0xff] }
 0x7d3   :  { %6443 = vmatprep.subr.bf16.mxu0 %v6705_v7 }
 0x7d5   :  { %6043 = vmatmul.mubr.f32.vlgmr.msra.gmra.mrb[10].mxu0 %v4122_v59 }
 0x7d6   :  { %6445 = vmatpush3.bf16.msra.mxu0 %v6842_v57  ;;  %6053 = vmatprep.mubr.msk.f32.mxu0 %vm6706_vm1, %v6707_v51  ;;  %v27_v57 = vld [vmem:[%s7292_s2 + $0x10] sm:$0xff] }
 0x7d7   :  { %6446 = vmatprep.subr.bf16.mxu0 %v6705_v7 }
 0x7da   :  { %6448 = vmatpush3.bf16.msra.mxu0 %v6851_v58  ;;  %v4657_v58 = vand.u32 4294901760, %v25_v49 }
 0x7db   :  { %6449 = vmatprep.subr.bf16.mxu0 %v6705_v7 }
 0x7dc   :  { %v4747_v4 = vsub.f32 %v25_v49, %v4657_v58 }
 0x7dd   :  { %6054 = vmatmul.mubr.f32.vlgmr.msra.gmra.mrb[10].mxu0 %v4123_v0 }
 0x7de   :  { %6451 = vmatpush3.bf16.msra.mxu0 %v6860_v60  ;;  %6064 = vmatprep.mubr.msk.f32.mxu0 %vm6706_vm1, %v6707_v51  ;;  %v4748_v6 = vand.u32 4294901760, %v4747_v4 }
 0x7df   :  { %6452 = vmatprep.subr.bf16.mxu0 %v6705_v7 }
 0x7e0   :  { %v4749_v11 = vsub.f32 %v4747_v4, %v4748_v6 }
 0x7e2   :  { %6454 = vmatpush3.bf16.msra.mxu0 %v6869_v61  ;;  %v4750_v15 = vand.u32 4294901760, %v4749_v11 }
 0x7e3   :  { %6455 = vmatprep.subr.bf16.mxu0 %v6705_v7 }
 0x7e5   :  { %6065 = vmatmul.mubr.f32.vlgmr.msra.gmra.mrb[10].mxu0 %v4124_v1 }
 0x7e6   :  { %6457 = vmatpush3.bf16.msra.mxu0 %v6880_v62  ;;  %6075 = vmatprep.mubr.msk.f32.mxu0 %vm6706_vm1, %v6707_v51 }
 0x7e7   :  { %6458 = vmatprep.subr.bf16.mxu0 %v6705_v7 }
 0x7ea   :  { %6460 = vmatpush3.bf16.msra.mxu0 %v6889_v63 }
 0x7eb   :  { %6461 = vmatprep.subr.bf16.mxu0 %v6705_v7 }
 0x7ed   :  { %6076 = vmatmul.mubr.f32.vlgmr.msra.gmra.mrb[10].mxu0 %v4122_v59 }
 0x7ee   :  { %6463 = vmatpush3.bf16.msra.mxu0 %v6860_v60  ;;  %6086 = vmatprep.mubr.msk.f32.mxu0 %vm6706_vm1, %v6707_v51  ;;  %v4660_v60 = vand.u32 4294901760, %v26_v56  ;;  %v4663_v51 = vand.u32 4294901760, %v27_v57 }
 0x7ef   :  { %6464 = vmatprep.subr.bf16.mxu0 %v6705_v7  ;;  %v28_v7 = vld [vmem:[%s7292_s2 + $0x18] sm:$0xff] }
 0x7f0   :  { %v7239_v62 = vpack.c.bf16 %v4660_v60, %v4657_v58  ;;  %v4754_v5 = vsub.f32 %v26_v56, %v4660_v60  ;;  %v4761_v13 = vsub.f32 %v27_v57, %v4663_v51 }
 0x7f2   :  { %6466 = vmatpush3.bf16.msra.mxu0 %v6869_v61  ;;  %v4666_v61 = vand.u32 4294901760, %v28_v7  ;;  %6468 = vmatprep.subr.bf16.mxu1 %v7239_v62  ;;  %v4755_v8 = vand.u32 4294901760, %v4754_v5  ;;  %v4762_v17 = vand.u32 4294901760, %v4761_v13  ;;  %v6483_v25 = vpack.c.bf16 %v4754_v5, %v4747_v4 }
 0x7f3   :  { %6470 = vmatpush3.bf16.msra.mxu1 %v7239_v62 }
 0x7f4   :  { %v7241_v63 = vpack.c.bf16 %v4666_v61, %v4663_v51  ;;  %v4756_v12 = vsub.f32 %v4754_v5, %v4755_v8  ;;  %v4768_v14 = vsub.f32 %v28_v7, %v4666_v61  ;;  %v4763_v20 = vsub.f32 %v4761_v13, %v4762_v17 }
 0x7f5   :  { %6087 = vmatmul.mubr.f32.vlgmr.msra.gmra.mrb[10].mxu0 %v4122_v59  ;;  %v6499_v27 = vpack.c.bf16 %v4755_v8, %v4748_v6 }
 0x7f6   :  { %6472 = vmatprep.subr.bf16.mxu1 %v7241_v63  ;;  %v4757_v16 = vand.u32 4294901760, %v4756_v12  ;;  %v4769_v18 = vand.u32 4294901760, %v4768_v14  ;;  %v4764_v22 = vand.u32 4294901760, %v4763_v20  ;;  %v6487_v26 = vpack.c.bf16 %v4768_v14, %v4761_v13 }
 0x7f7   :  { %6474 = vmatpush3.bf16.msra.mxu1 %v7241_v63 }
 0x7f8   :  { %v6475_v19 = vpack.c.bf16 %v4757_v16, %v4750_v15  ;;  %v4770_v21 = vsub.f32 %v4768_v14, %v4769_v18  ;;  %v6503_v28 = vpack.c.bf16 %v4769_v18, %v4762_v17 }
 0x7fa   :  { %6476 = vmatprep.subr.bf16.mxu1 %v6475_v19  ;;  %v4771_v23 = vand.u32 4294901760, %v4770_v21 }
 0x7fc   :  { %v6479_v24 = vpack.c.bf16 %v4771_v23, %v4764_v22 }
 0x8c8   :  { %v4534_v29 = vpop.f32.mrb[10].mxu0 }
 0x8c9   :  { %v4539_v31 = vrot.slane %v4534_v29, 1  ;;  %v4540_v32 = vrot.slane %v4534_v29, 2  ;;  %v6088_v33 = vpop.f32.mrb[11].mxu0 }
 0x8cb   :  { %v4543_v34 = vadd.f32 %v6933_v10, %v4539_v31  ;;  %v4544_v35 = vadd.f32 %v6931_v9, %v4540_v32 }
 0x8cd   :  { %6653 = vtanh.f32 %v4543_v34 }
 0x8ce   :  { %6655 = vtanh.f32 %v4544_v35 }
 0x8d7   :  { %v6654_v37 = vpop.eup %6653 }
 0x8d8   :  { %v6656_v38 = vpop.eup %6655  ;;  %v4639_v39 = vrot.slane %v6654_v37, %v4638_v36  ;;  %4553 = vst.msk [vmem:[#allocation4 - $0x7] sm:$0x80] %vm4552_vm11, %v6654_v37 }
 0x8d9   :  { %v4643_v40 = vrot.slane %v6656_v38, %v4638_v36  ;;  %v4549_v41 = vrot.slane %v6656_v38, 7 }
 0x8da   :  { %v4644_v42 = vsel %vm4635_vm12, %v4639_v39, %v7192_v52 }
 0x8db   :  { %v4651_v10 = vsel %vm545_vm3, %v4644_v42, 0  ;;  %v4645_v9 = vsel %vm4635_vm12, %v4643_v40, %v7195_v54  ;;  %4555 = vst.msk [vmem:[#allocation4 + $0x1] sm:$0x1] %vm4554_vm13, %v4549_v41 }
 0x8dc   :  { %v4725_v43 = vand.u32 4294901760, %v4651_v10  ;;  %v4654_v44 = vsel %vm545_vm3, %v4645_v9, 0 }
 0x8dd   :  { %v4735_v45 = vand.u32 4294901760, %v4654_v44 }
 0x8de   :  { %v4726_v46 = vsub.f32 %v4651_v10, %v4725_v43 }
 0x8df   :  { %v4736_v47 = vsub.f32 %v4654_v44, %v4735_v45 }
 0x8e0   :  { %v4727_v30 = vand.u32 4294901760, %v4726_v46 }
 0x8e1   :  { %v4737_v48 = vand.u32 4294901760, %v4736_v47 }
 0x8e2   :  { %v4728_v50 = vsub.f32 %v4726_v46, %v4727_v30 }
 0x8e3   :  { %v4738_v53 = vsub.f32 %v4736_v47, %v4737_v48 }
 0x8e4   :  { %v4729_v55 = vand.u32 4294901760, %v4728_v50 }
 0x8e5   :  { %v4739_v59 = vand.u32 4294901760, %v4738_v53 }
 0x8e6   :  { %6097 = vmatprep.mubr.f32.mxu1 %v4729_v55 }
 0x8e7   :  { %6098 = vmatmul.mubr.f32.vlgmr.msra.gmra.mrb[8].mxu1 %v4739_v59 }
 0x8e8   :  { %6478 = vmatpush3.bf16.msra.mxu1 %v6475_v19  ;;  %6108 = vmatprep.mubr.f32.mxu1 %v4725_v43 }
 0x8e9   :  { %6480 = vmatprep.subr.bf16.mxu1 %v6479_v24 }
 0x8ec   :  { %6482 = vmatpush3.bf16.msra.mxu1 %v6479_v24 }
 0x8ed   :  { %6484 = vmatprep.subr.bf16.mxu1 %v6483_v25 }
 0x8ef   :  { %6109 = vmatmul.mubr.f32.vlgmr.msra.gmra.mrb[8].mxu1 %v4735_v45 }
 0x8f0   :  { %6486 = vmatpush3.bf16.msra.mxu1 %v6483_v25  ;;  %6119 = vmatprep.mubr.f32.mxu1 %v4726_v46 }
 0x8f1   :  { %6488 = vmatprep.subr.bf16.mxu1 %v6487_v26 }
 0x8f4   :  { %6490 = vmatpush3.bf16.msra.mxu1 %v6487_v26 }
 0x8f5   :  { %6492 = vmatprep.subr.bf16.mxu1 %v7239_v62 }
 0x8f7   :  { %6120 = vmatmul.mubr.f32.vlgmr.msra.gmra.mrb[8].mxu1 %v4736_v47 }
 0x8f8   :  { %6494 = vmatpush3.bf16.msra.mxu1 %v7239_v62  ;;  %6130 = vmatprep.mubr.f32.mxu1 %v4727_v30 }
 0x8f9   :  { %6496 = vmatprep.subr.bf16.mxu1 %v7241_v63 }
 0x8fc   :  { %6498 = vmatpush3.bf16.msra.mxu1 %v7241_v63 }
 0x8fd   :  { %6500 = vmatprep.subr.bf16.mxu1 %v6499_v27 }
 0x8ff   :  { %6131 = vmatmul.mubr.f32.vlgmr.msra.gmra.mrb[8].mxu1 %v4737_v48 }
 0x900   :  { %6502 = vmatpush3.bf16.msra.mxu1 %v6499_v27  ;;  %6141 = vmatprep.mubr.f32.mxu1 %v4725_v43 }
 0x901   :  { %6504 = vmatprep.subr.bf16.mxu1 %v6503_v28 }
 0x904   :  { %6506 = vmatpush3.bf16.msra.mxu1 %v6503_v28 }
 0x905   :  { %6508 = vmatprep.subr.bf16.mxu1 %v7239_v62 }
 0x907   :  { %6142 = vmatmul.mubr.f32.vlgmr.msra.gmra.mrb[8].mxu1 %v4735_v45 }
 0x908   :  { %6510 = vmatpush3.bf16.msra.mxu1 %v7239_v62  ;;  %6152 = vmatprep.mubr.f32.mxu1 %v4725_v43 }
 0x909   :  { %6512 = vmatprep.subr.bf16.mxu1 %v7241_v63 }
 0x90c   :  { %6514 = vmatpush3.bf16.msra.mxu1 %v7241_v63 }
 0x90f   :  { %6153 = vmatmul.mubr.f32.vlgmr.msra.gmra.mrb[8].mxu1 %v4735_v45 }
 0x910   :  { %6668 = shalt.err (!%p6665_p4)
}
 0x911   :  { %s6669_s18 = scalar_lea.hbm %s7294_s4, 32 }
 0x912   :  { %p6670_p5 = scmp.ne.s32.totalorder %s7294_s4, %s6669_s18  ;;  %p6673_p6 = scmp.lt.u32.totalorder %s6669_s18, %s7294_s4 }
 0x914   :  { %p6675_p7 = pnand %p6673_p6, %p6670_p5 }
 0x916   :  { %6678 = shalt.err (!%p6675_p7)
}
 0x917   :  { %5208 = dma.vmem_to_hbm [thread:$0]  %s5206_s14, 32, %s7294_s4, [#allocation5]   ;;  %v5218_v52 = vld [vmem:[%s7292_s2 + $0x20] ss:$0 sm:$0xff]  ;;  %vm5184_vm14 = vcmask 64512  }
 0x918   :  { %s6709_s0 = smov [#allocation2]  }
 0x919   :  { %s5192_s27 = sshll.u32 %s6709_s0, 4  ;;  %s5193_s27 = int_to_ptr.vmem [resolvable:$true] %s5192_s27 }
 0x91a   :  { %s6679_s28 = scalar_lea.vmem %s5193_s27, 256  ;;  %p6684_p9 = scmp.lt.s32.totalorder %s5193_s27, %s5193_s27 }
 0x91b   :  { %p6680_p8 = scmp.ne.s32.totalorder %s5193_s27, %s6679_s28  ;;  %p6685_p10 = scmp.lt.s32.totalorder %s6679_s28, %s6679_s28 }
 0x91d   :  { %p6686_p11 = por %p6685_p10, %p6684_p9 }
 0x91f   :  { %p6687_p12 = pnand %p6686_p11, %p6680_p8 }
 0x9e2   :  { %v6154_v54 = vpop.f32.mrb[8].mxu1 }
 0x9e3   :  { %v6518_v0 = vadd.f32 %v6154_v54, %v5218_v52  ;;  %v5174_v1 = vpop.f32.mrb[9].mxu1 }
 0x9e4   :  { %v6519_v2 = vadd.f32 %v5218_v52, %v5174_v1 }
 0x9e5   :  { %5186 = vst.msk [vmem:[#allocation2 + $0x8] sm:$0xff] %vm5184_vm14, %v6518_v0 }
 0x9e6   :  { %5185 = vst.msk [vmem:[#allocation2] sm:$0xff] %vm5184_vm14, %v6519_v2 }
 0x9e7   :  { %6690 = shalt.err (!%p6687_p12)
}
 0x9e8   :  { %s6691_s2 = scalar_lea.hbm %s7293_s3, 256 }
 0x9e9   :  { %p6692_p13 = scmp.ne.s32.totalorder %s7293_s3, %s6691_s2  ;;  %p6695_p0 = scmp.lt.u32.totalorder %s6691_s2, %s7293_s3 }
 0x9eb   :  { %p6697_p1 = pnand %p6695_p0, %p6692_p13 }
 0x9ed   :  { %6700 = shalt.err (!%p6697_p1)
}
 0x9ee   :  { %s6710_s7 = smov 128   ;;  %s6711_s8 = smov 8  }
 0x9ef   :  { %5198 = dma.vmem_to_hbm [thread:$0]  %s5193_s27, 256, %s7293_s3, [#allocation3], %s6710_s7, %s6710_s7, %s6711_s8  }
 0x9f0   :  { %6701 = dma.done.wait [#allocation3], 256  }
 0x9f1   :  { %6702 = vsyncadd [#allocation3], 4294967040 }
 0x9f2   :  { %6703 = dma.done.wait [#allocation5], 32  }
 0x9f3   :  { %6704 = vsyncadd [#allocation5], 4294967264 }
 0x9f4   :  { %5215 = vsyncpa [#allocation3], 1 }
 0x9f5   :  { %5216 = vsyncpa [#allocation5], 1 }

</bundles_post_ra>
